<compile_context>
chip_gen: v5e
topology: v5e:2x2
jax: 0.10.0
libtpu: 0.0.40
codegen_flags: <defaults>
</compile_context>

<pallas_src>
import jax
import jax.numpy as jnp
from jax.experimental import pallas as pl
from jax.experimental.pallas import tpu as pltpu

_LANES = 128
_SUBLANES = 8


def _make_hinge_kernel(n_valid, tile_rows, tiles_per_split):
    """Kernel factory: bakes static sizes into the body via closure."""

    def kernel(x_ref, y_ref, o_ref):
        c = pl.program_id(0)          # TensorCore split ("parallel")
        i = pl.program_id(1)          # streaming reduction axis ("arbitrary")

        @pl.when(i == 0)
        def _():
            o_ref[...] = jnp.zeros_like(o_ref)

        x = x_ref[...].astype(jnp.float32)
        y = y_ref[...].astype(jnp.float32)
        h = jnp.maximum(1.0 - x + y, 0.0)

        # Mask everything past the true flattened length (covers both the
        # lane-pad tail and fully/partially out-of-bounds row tiles).
        block_row0 = (c * tiles_per_split + i) * tile_rows
        row_ids = jax.lax.broadcasted_iota(jnp.int32, (tile_rows, _LANES), 0)
        lane_ids = jax.lax.broadcasted_iota(jnp.int32, (tile_rows, _LANES), 1)
        gidx = (block_row0 + row_ids) * _LANES + lane_ids
        h = jnp.where(gidx < n_valid, h, 0.0)

        # (tile_rows, 128) -> (tile_rows//8, 8, 128) -> sum leading axis:
        # keeps the per-step work as plain VPU adds into a vreg-shaped
        # accumulator; the single cross-lane reduce happens in the wrapper.
        partial = h.reshape(tile_rows // _SUBLANES, _SUBLANES, _LANES).sum(axis=0)
        o_ref[0] += partial

    return kernel


def hinge_loss(x, y, *, tile_rows=2048):
    assert x.shape == y.shape, "reference HingeLoss assumes matching shapes"
    n_elems = int(x.size)

    xf = x.reshape(-1)
    yf = y.reshape(-1)

    # Minimal lane pad only if N is not a multiple of 128 (values are masked
    # in-kernel, so contents do not matter). No full-block padding pass.
    pad = (-n_elems) % _LANES
    if pad:
        xf = jnp.pad(xf, (0, pad))
        yf = jnp.pad(yf, (0, pad))

    rows = (n_elems + pad) // _LANES
    rows_padded = ((rows + _SUBLANES - 1) // _SUBLANES) * _SUBLANES
    tile_rows_eff = min(tile_rows, rows_padded)        # multiple of 8, VMEM-safe

    x2 = xf.reshape(rows, _LANES)
    y2 = yf.reshape(rows, _LANES)

    total_tiles = pl.cdiv(rows, tile_rows_eff)
    split = 2 if total_tiles >= 2 else 1               # 2 TCs on v7x
    tiles_per_split = pl.cdiv(total_tiles, split)

    def in_map(c, i):
        # Clamp so every DMA stays within the standard partial-edge regime;
        # the duplicated / out-of-range tiles are zeroed by the in-kernel mask.
        return (jnp.minimum(c * tiles_per_split + i, total_tiles - 1), 0)

    kernel = _make_hinge_kernel(n_elems, tile_rows_eff, tiles_per_split)

    partials = pl.pallas_call(
        kernel,
        out_shape=jax.ShapeDtypeStruct((split, _SUBLANES, _LANES), jnp.float32),
        grid_spec=pltpu.PrefetchScalarGridSpec(
            num_scalar_prefetch=0,
            grid=(split, tiles_per_split),
            in_specs=[
                pl.BlockSpec((tile_rows_eff, _LANES), in_map),
                pl.BlockSpec((tile_rows_eff, _LANES), in_map),
            ],
            out_specs=pl.BlockSpec((1, _SUBLANES, _LANES), lambda c, i: (c, 0, 0)),
        ),
        compiler_params=pltpu.CompilerParams(
            dimension_semantics=("parallel", "arbitrary"),
        ),
    )(x2, y2)

    # Final cross-lane/sublane reduce + mean outside the kernel.
    return jnp.sum(partials) / n_elems


if __name__ == "__main__":
    key = jax.random.PRNGKey(0)
    kx, ky = jax.random.split(key)
    # shapes consistent with a ranking-loss use: per-example scores
    x = jax.random.normal(kx, (2, 4, 16, 16), dtype=jnp.float32)  # positive scores
    y = jax.random.normal(ky, (2, 4, 16, 16), dtype=jnp.float32)  # negative scores

    loss = hinge_loss(x, y)
    jax.block_until_ready(loss)

    # reference check in plain JAX
    ref = jnp.mean(jnp.maximum(1.0 - x + y, 0.0))
    assert jnp.allclose(loss, ref, atol=1e-6, rtol=1e-5), (loss, ref)
    print("KERNEL_OK")
</pallas_src>

<mosaic_0001>
module attributes {stable_mosaic.version = 11 : i64} {
  func.func @kernel(%arg0: i32, %arg1: i32, %arg2: memref<16x128xf32, #tpu.memory_space<vmem>>, %arg3: memref<16x128xf32, #tpu.memory_space<vmem>>, %arg4: memref<1x8x128xf32, #tpu.memory_space<vmem>>) attributes {dimension_semantics = [#tpu.dimension_semantics<parallel>, #tpu.dimension_semantics<arbitrary>], iteration_bounds = array<i64: 1, 1>, scalar_prefetch = 0 : i64, scratch_operands = 0 : i64, tpu.core_type = #tpu.core_type<tc>, window_params = [{transform_indices = @transform_0, window_bounds = array<i64: 16, 128>}, {transform_indices = @transform_1, window_bounds = array<i64: 16, 128>}, {transform_indices = @transform_2, window_bounds = array<i64: 1, 8, 128>}]} {
    %c0_i32 = arith.constant 0 : i32
    %0 = arith.cmpi eq, %arg1, %c0_i32 : i32
    %1 = arith.extui %0 : i1 to i32
    %c0_i32_0 = arith.constant 0 : i32
    %2 = arith.cmpi ne, %1, %c0_i32_0 : i32
    scf.if %2 {
      %cst_13 = arith.constant 0.000000e+00 : f32
      %32 = vector.broadcast %cst_13 : f32 to vector<1x8x128xf32>
      %c0_14 = arith.constant 0 : index
      %c0_15 = arith.constant 0 : index
      %c0_16 = arith.constant 0 : index
      %33 = vector.load %arg4[%c0_14, %c0_15, %c0_16] : memref<1x8x128xf32, #tpu.memory_space<vmem>>, vector<1x8x128xf32>
      tpu.vector_store %arg4[%c0_14, %c0_15, %c0_16], %32 {strides = array<i32>} : memref<1x8x128xf32, #tpu.memory_space<vmem>>, vector<1x8x128xf32>,
    } else {
    }
    %c0 = arith.constant 0 : index
    %c0_1 = arith.constant 0 : index
    %3 = vector.load %arg2[%c0, %c0_1] : memref<16x128xf32, #tpu.memory_space<vmem>>, vector<16x128xf32>
    %c0_2 = arith.constant 0 : index
    %c0_3 = arith.constant 0 : index
    %4 = vector.load %arg3[%c0_2, %c0_3] : memref<16x128xf32, #tpu.memory_space<vmem>>, vector<16x128xf32>
    %cst = arith.constant 1.000000e+00 : f32
    %5 = vector.broadcast %cst : f32 to vector<16x128xf32>
    %6 = arith.subf %5, %3 : vector<16x128xf32>
    %7 = arith.addf %6, %4 : vector<16x128xf32>
    %cst_4 = arith.constant 0.000000e+00 : f32
    %8 = vector.broadcast %cst_4 : f32 to vector<16x128xf32>
    %9 = arith.maximumf %7, %8 : vector<16x128xf32>
    %c1_i32 = arith.constant 1 : i32
    %10 = arith.muli %arg0, %c1_i32 : i32
    %11 = arith.addi %10, %arg1 : i32
    %c16_i32 = arith.constant 16 : i32
    %12 = arith.muli %11, %c16_i32 : i32
    %13 = tpu.iota {dimensions = array<i32: 0>} : vector<16x128xi32>
    %14 = tpu.iota {dimensions = array<i32: 1>} : vector<16x128xi32>
    %15 = vector.broadcast %12 : i32 to vector<16x128xi32>
    %16 = arith.addi %15, %13 : vector<16x128xi32>
    %c128_i32 = arith.constant 128 : i32
    %17 = vector.broadcast %c128_i32 : i32 to vector<16x128xi32>
    %18 = arith.muli %16, %17 : vector<16x128xi32>
    %19 = arith.addi %18, %14 : vector<16x128xi32>
    %c2048_i32 = arith.constant 2048 : i32
    %20 = vector.broadcast %c2048_i32 : i32 to vector<16x128xi32>
    %21 = arith.cmpi slt, %19, %20 : vector<16x128xi32>
    %cst_5 = arith.constant 0.000000e+00 : f32
    %22 = vector.broadcast %cst_5 : f32 to vector<16x128xf32>
    %23 = arith.select %21, %9, %22 : vector<16x128xi1>, vector<16x128xf32>
    %24 = vector.shape_cast %23 : vector<16x128xf32> to vector<2x8x128xf32>
    %cst_6 = arith.constant dense<0.000000e+00> : vector<8x128xf32>
    %25 = vector.multi_reduction <add>, %24, %cst_6 [0] : vector<2x8x128xf32> to vector<8x128xf32>
    %c0_7 = arith.constant 0 : index
    %c0_8 = arith.constant 0 : index
    %c0_9 = arith.constant 0 : index
    %26 = vector.load %arg4[%c0_7, %c0_8, %c0_9] : memref<1x8x128xf32, #tpu.memory_space<vmem>>, vector<1x8x128xf32>
    %27 = vector.shape_cast %26 : vector<1x8x128xf32> to vector<8x128xf32>
    %28 = arith.addf %27, %25 : vector<8x128xf32>
    %c0_10 = arith.constant 0 : index
    %c0_11 = arith.constant 0 : index
    %c0_12 = arith.constant 0 : index
    %29 = vector.load %arg4[%c0_10, %c0_11, %c0_12] : memref<1x8x128xf32, #tpu.memory_space<vmem>>, vector<1x8x128xf32>
    %30 = vector.shape_cast %29 : vector<1x8x128xf32> to vector<8x128xf32>
    %31 = vector.shape_cast %28 : vector<8x128xf32> to vector<1x8x128xf32>
    tpu.vector_store %arg4[%c0_10, %c0_11, %c0_12], %31 {strides = array<i32>} : memref<1x8x128xf32, #tpu.memory_space<vmem>>, vector<1x8x128xf32>,
    return
  }
  func.func @transform_0(%arg0: i32, %arg1: i32) -> (i32, i32) {
    %c1_i32 = arith.constant 1 : i32
    %0 = arith.muli %arg0, %c1_i32 : i32
    %1 = arith.addi %0, %arg1 : i32
    %c0_i32 = arith.constant 0 : i32
    %2 = arith.minsi %1, %c0_i32 : i32
    %c0_i32_0 = arith.constant 0 : i32
    %c0_i32_1 = arith.constant 0 : i32
    return %2, %c0_i32_0 : i32, i32
  }
  func.func @transform_1(%arg0: i32, %arg1: i32) -> (i32, i32) {
    %c1_i32 = arith.constant 1 : i32
    %0 = arith.muli %arg0, %c1_i32 : i32
    %1 = arith.addi %0, %arg1 : i32
    %c0_i32 = arith.constant 0 : i32
    %2 = arith.minsi %1, %c0_i32 : i32
    %c0_i32_0 = arith.constant 0 : i32
    %c0_i32_1 = arith.constant 0 : i32
    return %2, %c0_i32_0 : i32, i32
  }
  func.func @transform_2(%arg0: i32, %arg1: i32) -> (i32, i32, i32) {
    %c0_i32 = arith.constant 0 : i32
    %c0_i32_0 = arith.constant 0 : i32
    %c0_i32_1 = arith.constant 0 : i32
    return %arg0, %c0_i32, %c0_i32_0 : i32, i32, i32
  }
}

</mosaic_0001>

<bundles_post_ra>
// kernel: tpu_custom_call.1
= control target key start
LH: loop header
LB: loop body
LE: loop exit
PB: predicated region body
PF: predicated region fallthrough
CT: control target
= control target key end

     0   :  { %7 = vsyncpa [#allocation3], 0  ;;  %s236_s0 = inlined_call_operand.hbm [shape: f32[16,128], index: 0, kind: input, shape index: {}]   ;;  %s237_s1 = inlined_call_operand.hbm [shape: f32[16,128], index: 1, kind: input, shape index: {}]   ;;  %s238_s2 = inlined_call_operand.hbm [shape: f32[1,8,128], index: 2, kind: output, shape index: {}]  }
   0x1   :  { %8 = vsyncpa [#allocation6], 0 }
   0x2   :  { %9 = vsyncpa [#allocation4], 0  ;;  %s20_s11 = sshll.u32 %s236_s0, 4  ;;  %s207_s12 = smov [#allocation2]   ;;  %s21_s11 = int_to_ptr.hbm [resolvable:$true] %s20_s11 }
   0x3   :  { %s22_s13 = sshll.u32 %s207_s12, 4  ;;  %s39_s16 = sshll.u32 %s237_s1, 4  ;;  %s23_s13 = int_to_ptr.vmem [resolvable:$true] %s22_s13  ;;  %s40_s16 = int_to_ptr.hbm [resolvable:$true] %s39_s16 }
   0x4   :  { %s208_s17 = smov 128   ;;  %s209_s18 = smov 8  }
   0x5   :  { %28 = dma.hbm_to_vmem [thread:$0]  %s21_s11, 256, %s23_s13, [#allocation3], %s208_s17, %s208_s17, %s209_s18  }
   0x6   :  { %s210_s19 = smov [#allocation5]  }
   0x7   :  { %s41_s20 = sshll.u32 %s210_s19, 4  ;;  %s42_s20 = int_to_ptr.vmem [resolvable:$true] %s41_s20 }
   0x8   :  { %47 = dma.hbm_to_vmem [thread:$0]  %s40_s16, 256, %s42_s20, [#allocation6], %s208_s17, %s208_s17, %s209_s18  }
   0x9   :  { %201 = dma.done.wait [#allocation3], 256  }
   0xa   :  { %202 = vsyncadd [#allocation3], 4294967040 }
   0xb   :  { %203 = dma.done.wait [#allocation6], 256  }
   0xc   :  { %204 = vsyncadd [#allocation6], 4294967040  ;;  %v81_v0 = vlaneseq  ;;  %v69_v6 = vld [vmem:[#allocation2] sm:$0xff]  ;;  %v70_v7 = vld [vmem:[#allocation2 + $0x8] sm:$0xff]  ;;  %s211_s0 = smov [#allocation7]   ;;  %s108_s23 = sshll.u32 %s238_s2, 4  ;;  %s109_s23 = int_to_ptr.hbm [resolvable:$true] %s108_s23 }
   0xd   :  { %v71_v8 = vld [vmem:[#allocation5] sm:$0xff]  ;;  %v72_v10 = vld [vmem:[#allocation5 + $0x8] sm:$0xff]  ;;  %v73_v11 = vsub.f32 1.0, %v69_v6  ;;  %v74_v12 = vsub.f32 1.0, %v70_v7  ;;  %s106_s1 = sshll.u32 %s211_s0, 4  ;;  %s107_s1 = int_to_ptr.vmem [resolvable:$true] %s106_s1 }
   0xe   :  { %v82_v1 = vshrl.u32 %v81_v0, 7  ;;  %v85_v2 = vand.u32 127, %v81_v0 }
   0xf   :  { %v75_v14 = vadd.f32 %v73_v11, %v71_v8  ;;  %v76_v15 = vadd.f32 %v74_v12, %v72_v10 }
  0x10   :  { %v83_v3 = vadd.s32 8, %v82_v1  ;;  %v89_v4 = vmul.u32 128, %v82_v1 }
  0x11   :  { %v77_v16 = vmax.f32 %v75_v14, 0.0  ;;  %v78_v17 = vmax.f32 %v76_v15, 0.0 }
  0x12   :  { %v90_v5 = vmul.u32 128, %v83_v3  ;;  %v91_v9 = vadd.s32 %v89_v4, %v85_v2 }
  0x14   :  { %v92_v13 = vadd.s32 %v90_v5, %v85_v2  ;;  %vm93_vm0 = vcmp.lt.s32.totalorder %v91_v9, 2048 }
  0x15   :  { %v95_v18 = vsel %vm93_vm0, %v77_v16, 0.0 }
  0x16   :  { %vm94_vm1 = vcmp.lt.s32.totalorder %v92_v13, 2048 }
  0x17   :  { %v96_v19 = vsel %vm94_vm1, %v78_v17, 0.0 }
  0x18   :  { %v97_v20 = vadd.f32 %v96_v19, %v95_v18 }
  0x1a   :  { %100 = vst [vmem:[#allocation7] sm:$0xff] %v97_v20 }
  0x1b   :  { %111 = dma.vmem_to_hbm [thread:$0]  %s107_s1, 128, %s109_s23, [#allocation4]  }
  0x1c   :  { %205 = dma.done.wait [#allocation4], 128  }
  0x1d   :  { %206 = vsyncadd [#allocation4], 4294967168 }
  0x1e   :  { %116 = vsyncpa [#allocation3], 1 }
  0x1f   :  { %117 = vsyncpa [#allocation6], 1 }
  0x20   :  { %118 = vsyncpa [#allocation4], 1 }

</bundles_post_ra>
